<compile_context>
chip_gen: v7x
topology: tpu7x:2x2x1
jax: 0.10.0
libtpu: 0.0.40
codegen_flags: <defaults>
</compile_context>

<pallas_src>
import functools

import jax
import jax.numpy as jnp
from jax.experimental import pallas as pl
from jax.experimental.pallas import tpu as pltpu

_MiB = 1024 * 1024


def _round_up(x, m):
    return ((x + m - 1) // m) * m


@functools.lru_cache(maxsize=None)
def _hw_config():
    """Returns (vmem_budget_bytes, tm_default, tpf_default, multi_tc)."""
    kind = ""
    try:
        kind = jax.devices()[0].device_kind.lower()
    except Exception:
        pass

    vmem_capacity = None
    try:
        get_info = getattr(pltpu, "get_tpu_info", None)
        if get_info is not None:
            cap = getattr(get_info(), "vmem_capacity_bytes", None)
            if cap:
                vmem_capacity = int(cap)
    except Exception:
        vmem_capacity = None

    is_v5e = ("v5 lite" in kind) or ("v5e" in kind) or ("v5litepod" in kind)
    is_v6 = "v6" in kind
    is_v7 = ("v7" in kind) or ("tpu7" in kind)
    is_old = ("v2" in kind) or ("v3" in kind)

    if vmem_capacity is None:
        if is_old:
            vmem_capacity = 16 * _MiB
        elif is_v5e or is_v6:
            vmem_capacity = 128 * _MiB
        else:
            vmem_capacity = 64 * _MiB   # v7x / unknown: conservative

    # VMEM budget handed to the compiler, leaving headroom for internal scratch:
    # ~100 MiB on 128-MiB parts (v5e/v6e), ~52 MiB on v7x's 64 MiB per TC.
    if vmem_capacity >= 128 * _MiB:
        budget = 100 * _MiB
    elif vmem_capacity >= 64 * _MiB:
        budget = 52 * _MiB
    else:
        budget = int(vmem_capacity * 3 // 4)

    # Generation-aware default tiles:
    #   v6e ridge ~650 FLOP/B  -> tm ~768, tpf up to 1024.
    #   v7x ridge ~310 FLOP/B, 64 MiB VMEM -> tm ~512, tpf 512.
    #   v5e ridge ~240 FLOP/B  -> tm ~384, tpf up to 2048.
    if vmem_capacity < 96 * _MiB:
        tm_def, tpf_def = 512, 512
    elif is_v5e:
        tm_def, tpf_def = 384, 2048
    else:
        tm_def, tpf_def = 768, 1024

    # Chips whose "parallel" grid axes are sharded over 2 TensorCores.
    multi_tc = is_v7 or ("v4" in kind) or (("v5" in kind) and not is_v5e)
    return budget, tm_def, tpf_def, multi_tc


def _footprint_bytes(tm, tpf, hid, xbytes, obytes, cbytes, use_scratch):
    """Rough per-step VMEM footprint (double-buffered tiles) with ~15% headroom."""
    io_tiles = 2 * tm * hid * xbytes + 2 * tm * hid * obytes          # x / out
    weights = 2 * 2 * hid * tpf * cbytes + 2 * (tpf + hid) * 4        # w1+w2, b1+b2
    interm = tm * tpf * 4 + tm * tpf * cbytes + tm * hid * cbytes     # h f32, h cast, x cast
    acc = tm * hid * 4 if use_scratch else 0                          # f32 accumulator
    return int((io_tiles + weights + interm + acc) * 1.15)


def _ffn_single_kernel(x_ref, w1_ref, b1_ref, w2_ref, b2_ref, o_ref):
    """Weight-resident fast path: whole pf contraction in one pass, no scratch."""
    x = x_ref[...].astype(w1_ref.dtype)               # cast in-kernel (no HBM pre-pass)
    h = jnp.dot(x, w1_ref[...], preferred_element_type=jnp.float32)
    h = jnp.maximum(h + b1_ref[...], 0.0)             # bias + relu in f32
    # dropout: eval mode -> identity
    o = jnp.dot(h.astype(w2_ref.dtype), w2_ref[...],
                preferred_element_type=jnp.float32)
    o_ref[...] = (o + b2_ref[...]).astype(o_ref.dtype)


def _ffn_ktiled_kernel(x_ref, w1_ref, b1_ref, w2_ref, b2_ref, o_ref, *scratch):
    """pf-tiled path. If no scratch is passed, the output is f32 and we
    accumulate directly into o_ref (its block index is constant across k)."""
    acc_ref = scratch[0] if scratch else o_ref
    k = pl.program_id(1)

    @pl.when(k == 0)
    def _init():
        acc_ref[...] = jnp.zeros_like(acc_ref)

    x = x_ref[...].astype(w1_ref.dtype)
    h = jnp.dot(x, w1_ref[...], preferred_element_type=jnp.float32)
    h = jnp.maximum(h + b1_ref[...], 0.0)
    # dropout: eval mode -> identity
    acc_ref[...] += jnp.dot(h.astype(w2_ref.dtype), w2_ref[...],
                            preferred_element_type=jnp.float32)

    @pl.when(k == pl.num_programs(1) - 1)
    def _finalize():
        # b2 added exactly once, in the finalize step.
        o_ref[...] = (acc_ref[...] + b2_ref[...]).astype(o_ref.dtype)


@functools.partial(jax.jit, static_argnames=("tm", "tpf", "compute_dtype", "out_dtype"))
def positionwise_ffn(x, w1, b1, w2, b2, *, tm=None, tpf=None,
                     compute_dtype=jnp.bfloat16, out_dtype=None):
    """x: (batch, seq, hid). w1: (hid, pf), b1: (pf,), w2: (pf, hid), b2: (hid,)."""
    batch, seq, hid = x.shape
    pf = w1.shape[1]
    # Lane-dense requirement (masked vst / wasted MXU lanes otherwise).
    assert hid % 128 == 0 and pf % 128 == 0, "hid and pf must be multiples of 128"

    M = batch * seq
    if out_dtype is None:
        out_dtype = x.dtype
    xbytes = jnp.dtype(x.dtype).itemsize
    obytes = jnp.dtype(out_dtype).itemsize
    cbytes = jnp.dtype(compute_dtype).itemsize

    budget, tm_def, tpf_def, multi_tc = _hw_config()

    # ---- row tile selection --------------------------------------------------
    m8 = _round_up(M, 8)
    if tm is None:
        tm = tm_def
    tm = max(8, _round_up(min(tm, m8), 8))
    # Force >= 2 row steps only on 2-TensorCore chips so the "parallel" row axis
    # can be sharded; on single-TC v5e/v6e this would just double weight
    # re-streaming and grid overhead.
    if multi_tc and m8 >= 16 and m8 <= tm:
        tm = max(8, ((m8 // 2) // 8) * 8)

    # ---- pf (reduction) tile selection --------------------------------------
    tpf_cands = [c for c in range(128, pf + 1, 128) if pf % c == 0]
    if tpf is None:
        # Weight-resident fast path: whole pf in one pass when it fits.
        if _footprint_bytes(tm, pf, hid, xbytes, obytes, cbytes, False) <= budget:
            tpf = pf
        else:
            tpf = max([c for c in tpf_cands if c <= tpf_def] or [128])
    else:
        tpf = max([c for c in tpf_cands if c <= max(tpf, 128)] or [128])

    # ---- auto-shrink until the footprint fits the VMEM budget ---------------
    def _fits(tm_, tpf_):
        use_scratch = (tpf_ != pf) and (jnp.dtype(out_dtype) != jnp.dtype(jnp.float32))
        return _footprint_bytes(tm_, tpf_, hid, xbytes, obytes, cbytes,
                                use_scratch) <= budget

    while not _fits(tm, tpf) and (tm > 8 or tpf > 128):
        lower_tpf = max([c for c in tpf_cands if c < tpf], default=None)
        # Prefer keeping tm large (it sets the arithmetic intensity against HBM);
        # shed tpf first down to ~256, then halve tm, then shed tpf further.
        if lower_tpf is not None and tpf > 256:
            tpf = lower_tpf
        elif tm > 128:
            tm = max(8, _round_up(tm // 2, 8))
        elif lower_tpf is not None:
            tpf = lower_tpf
        else:
            tm = max(8, _round_up(tm // 2, 8))

    n_row = pl.cdiv(M, tm)          # never drops tail rows
    M_pad = n_row * tm
    n_k = pf // tpf

    # ---- operand prep --------------------------------------------------------
    # x is NOT cast in the wrapper (cast happens in-kernel on the VMEM tile),
    # avoiding a full extra HBM read+write of x before the kernel starts.
    x2 = x.reshape(M, hid)
    if M_pad != M:
        x2 = jnp.pad(x2, ((0, M_pad - M), (0, 0)))
    w1c = w1.astype(compute_dtype)
    w2c = w2.astype(compute_dtype)
    b1_2 = b1.reshape(1, pf).astype(jnp.float32)
    b2_2 = b2.reshape(1, hid).astype(jnp.float32)

    if n_k == 1:
        # Weight-resident fast path: weights/biases have a constant block index,
        # so the pipeline DMAs them from HBM exactly once per core.
        # TODO(synk): pipeline_mode=pl.Buffered(1) on the weight specs would drop
        # their spare double-buffer; omitted for compile-safety and accounted
        # for in the VMEM budget instead.
        grid_spec = pltpu.PrefetchScalarGridSpec(
            num_scalar_prefetch=0,
            grid=(n_row,),
            in_specs=[
                pl.BlockSpec((tm, hid), lambda i: (i, 0)),   # x row-tile
                pl.BlockSpec((hid, pf), lambda i: (0, 0)),   # w1 (resident)
                pl.BlockSpec((1, pf), lambda i: (0, 0)),     # b1 (resident)
                pl.BlockSpec((pf, hid), lambda i: (0, 0)),   # w2 (resident)
                pl.BlockSpec((1, hid), lambda i: (0, 0)),    # b2 (resident)
            ],
            out_specs=pl.BlockSpec((tm, hid), lambda i: (i, 0)),
            scratch_shapes=[],
        )
        kernel = _ffn_single_kernel
        dim_sem = ("parallel",)
    else:
        use_scratch = jnp.dtype(out_dtype) != jnp.dtype(jnp.float32)
        grid_spec = pltpu.PrefetchScalarGridSpec(
            num_scalar_prefetch=0,
            grid=(n_row, n_k),
            in_specs=[
                pl.BlockSpec((tm, hid), lambda i, k: (i, 0)),   # x row-tile
                pl.BlockSpec((hid, tpf), lambda i, k: (0, k)),  # w1 pf-tile
                pl.BlockSpec((1, tpf), lambda i, k: (0, k)),    # b1 pf-tile
                pl.BlockSpec((tpf, hid), lambda i, k: (k, 0)),  # w2 pf-tile
                pl.BlockSpec((1, hid), lambda i, k: (0, 0)),    # b2 (constant)
            ],
            out_specs=pl.BlockSpec((tm, hid), lambda i, k: (i, 0)),
            scratch_shapes=([pltpu.VMEM((tm, hid), jnp.float32)]
                            if use_scratch else []),
        )
        kernel = _ffn_ktiled_kernel
        dim_sem = ("parallel", "arbitrary")

    out = pl.pallas_call(
        kernel,
        out_shape=jax.ShapeDtypeStruct((M_pad, hid), out_dtype),
        grid_spec=grid_spec,
        compiler_params=pltpu.CompilerParams(
            dimension_semantics=dim_sem,
            vmem_limit_bytes=budget,
        ),
    )(x2, w1c, b1_2, w2c, b2_2)

    return out[:M].reshape(batch, seq, hid)


def _reference(x, w1, b1, w2, b2):
    h = jnp.maximum(jnp.einsum("bsh,hp->bsp", x, w1) + b1, 0.0)
    return jnp.einsum("bsp,ph->bsh", h, w2) + b2


if __name__ == "__main__":
    # Small but lane-dense shapes (hid/pf multiples of 128).
    batch, seq, hid, pf = 2, 8, 128, 256
    dropout_p = 0.1  # eval mode -> unused

    key = jax.random.PRNGKey(0)
    kx, kw1, kb1, kw2, kb2 = jax.random.split(key, 5)

    x = jax.random.normal(kx, (batch, seq, hid), dtype=jnp.float32)

    # Deterministic parameter init (uniform, PyTorch-Linear-style bounds).
    bound1 = 1.0 / (hid ** 0.5)
    bound2 = 1.0 / (pf ** 0.5)
    w1 = jax.random.uniform(kw1, (hid, pf), minval=-bound1, maxval=bound1,
                            dtype=jnp.float32)
    b1 = jax.random.uniform(kb1, (pf,), minval=-bound1, maxval=bound1,
                            dtype=jnp.float32)
    w2 = jax.random.uniform(kw2, (pf, hid), minval=-bound2, maxval=bound2,
                            dtype=jnp.float32)
    b2 = jax.random.uniform(kb2, (hid,), minval=-bound2, maxval=bound2,
                            dtype=jnp.float32)

    ref = _reference(x, w1, b1, w2, b2)

    # 1) default: weight-resident fast path, bf16 MXU feed, f32 output.
    out_bf16 = positionwise_ffn(x, w1, b1, w2, b2)
    # 2) f32 compute path (tight numerics check), fast path.
    out_f32 = positionwise_ffn(x, w1, b1, w2, b2, compute_dtype=jnp.float32)
    # 3) forced pf-tiled path (n_k=2), f32 output -> accumulate into o_ref.
    out_tiled = positionwise_ffn(x, w1, b1, w2, b2, tm=8, tpf=128,
                                 compute_dtype=jnp.float32)
    # 4) forced pf-tiled path with bf16 output -> f32 scratch accumulator.
    out_tiled_bf16 = positionwise_ffn(x, w1, b1, w2, b2, tm=8, tpf=128,
                                      out_dtype=jnp.bfloat16)
    # 5) non-multiple-of-8 row count -> exercises tail-row zero padding.
    x_odd = x[:, :7]
    out_odd = positionwise_ffn(x_odd, w1, b1, w2, b2, compute_dtype=jnp.float32)

    outs = jax.block_until_ready((out_bf16, out_f32, out_tiled,
                                  out_tiled_bf16, out_odd))
    out_bf16, out_f32, out_tiled, out_tiled_bf16, out_odd = outs

    assert out_bf16.shape == (batch, seq, hid)
    assert out_f32.shape == (batch, seq, hid)
    assert out_odd.shape == (batch, 7, hid)
    assert jnp.allclose(out_f32, ref, atol=1e-4, rtol=1e-4), "f32 mismatch vs reference"
    assert jnp.allclose(out_tiled, ref, atol=1e-4, rtol=1e-4), "tiled f32 mismatch"
    assert jnp.allclose(out_odd, ref[:, :7], atol=1e-4, rtol=1e-4), "padded-rows mismatch"
    assert jnp.allclose(out_bf16, ref, atol=5e-2, rtol=5e-2), "bf16 mismatch vs reference"
    assert jnp.allclose(out_tiled_bf16.astype(jnp.float32), ref,
                        atol=7.5e-2, rtol=7.5e-2), "tiled bf16-out mismatch"

    print("KERNEL_OK")
</pallas_src>

<mosaic_0001>
module attributes {stable_mosaic.version = 11 : i64} {
  func.func @_ffn_single_kernel(%arg0: i32, %arg1: memref<16x128xf32, #tpu.memory_space<vmem>>, %arg2: memref<128x256xbf16, #tpu.memory_space<vmem>>, %arg3: memref<1x256xf32, #tpu.memory_space<vmem>>, %arg4: memref<256x128xbf16, #tpu.memory_space<vmem>>, %arg5: memref<1x128xf32, #tpu.memory_space<vmem>>, %arg6: memref<16x128xf32, #tpu.memory_space<vmem>>) attributes {dimension_semantics = [#tpu.dimension_semantics<parallel>], iteration_bounds = array<i64: 1>, scalar_prefetch = 0 : i64, scratch_operands = 0 : i64, tpu.core_type = #tpu.core_type<tc>, window_params = [{transform_indices = @transform_0, window_bounds = array<i64: 16, 128>}, {pipeline_mode = #tpu.pipeline_mode<synchronous>, transform_indices = @transform_1, window_bounds = array<i64: 128, 256>}, {pipeline_mode = #tpu.pipeline_mode<synchronous>, transform_indices = @transform_2, window_bounds = array<i64: 1, 256>}, {pipeline_mode = #tpu.pipeline_mode<synchronous>, transform_indices = @transform_3, window_bounds = array<i64: 256, 128>}, {pipeline_mode = #tpu.pipeline_mode<synchronous>, transform_indices = @transform_4, window_bounds = array<i64: 1, 128>}, {transform_indices = @transform_5, window_bounds = array<i64: 16, 128>}]} {
    %c0 = arith.constant 0 : index
    %c0_0 = arith.constant 0 : index
    %0 = vector.load %arg1[%c0, %c0_0] : memref<16x128xf32, #tpu.memory_space<vmem>>, vector<16x128xf32>
    %1 = arith.truncf %0 : vector<16x128xf32> to vector<16x128xbf16>
    %c0_1 = arith.constant 0 : index
    %c0_2 = arith.constant 0 : index
    %2 = vector.load %arg2[%c0_1, %c0_2] : memref<128x256xbf16, #tpu.memory_space<vmem>>, vector<128x256xbf16>
    %cst = arith.constant dense<0.000000e+00> : vector<16x256xf32>
    %3 = tpu.matmul %1, %2, %cst {dimension_numbers = #tpu.dot_dimension_numbers<[1], [0], [0], [1], [0, 0, 1, 1], [], []>} : vector<16x128xbf16>, vector<128x256xbf16>, vector<16x256xf32> -> vector<16x256xf32>
    %c0_3 = arith.constant 0 : index
    %c0_4 = arith.constant 0 : index
    %4 = vector.load %arg3[%c0_3, %c0_4] : memref<1x256xf32, #tpu.memory_space<vmem>>, vector<1x256xf32>
    %5 = vector.broadcast %4 : vector<1x256xf32> to vector<16x256xf32>
    %6 = arith.addf %3, %5 : vector<16x256xf32>
    %cst_5 = arith.constant 0.000000e+00 : f32
    %7 = vector.broadcast %cst_5 : f32 to vector<16x256xf32>
    %8 = arith.maximumf %6, %7 : vector<16x256xf32>
    %9 = arith.truncf %8 : vector<16x256xf32> to vector<16x256xbf16>
    %c0_6 = arith.constant 0 : index
    %c0_7 = arith.constant 0 : index
    %10 = vector.load %arg4[%c0_6, %c0_7] : memref<256x128xbf16, #tpu.memory_space<vmem>>, vector<256x128xbf16>
    %cst_8 = arith.constant dense<0.000000e+00> : vector<16x128xf32>
    %11 = tpu.matmul %9, %10, %cst_8 {dimension_numbers = #tpu.dot_dimension_numbers<[1], [0], [0], [1], [0, 0, 1, 1], [], []>} : vector<16x256xbf16>, vector<256x128xbf16>, vector<16x128xf32> -> vector<16x128xf32>
    %c0_9 = arith.constant 0 : index
    %c0_10 = arith.constant 0 : index
    %12 = vector.load %arg5[%c0_9, %c0_10] : memref<1x128xf32, #tpu.memory_space<vmem>>, vector<1x128xf32>
    %13 = vector.broadcast %12 : vector<1x128xf32> to vector<16x128xf32>
    %14 = arith.addf %11, %13 : vector<16x128xf32>
    %c0_11 = arith.constant 0 : index
    %c0_12 = arith.constant 0 : index
    %15 = vector.load %arg6[%c0_11, %c0_12] : memref<16x128xf32, #tpu.memory_space<vmem>>, vector<16x128xf32>
    tpu.vector_store %arg6[%c0_11, %c0_12], %14 {strides = array<i32>} : memref<16x128xf32, #tpu.memory_space<vmem>>, vector<16x128xf32>,
    return
  }
  func.func @transform_0(%arg0: i32) -> (i32, i32) {
    %c0_i32 = arith.constant 0 : i32
    %c0_i32_0 = arith.constant 0 : i32
    return %arg0, %c0_i32 : i32, i32
  }
  func.func @transform_1(%arg0: i32) -> (i32, i32) {
    %c0_i32 = arith.constant 0 : i32
    %c0_i32_0 = arith.constant 0 : i32
    %c0_i32_1 = arith.constant 0 : i32
    return %c0_i32, %c0_i32_0 : i32, i32
  }
  func.func @transform_2(%arg0: i32) -> (i32, i32) {
    %c0_i32 = arith.constant 0 : i32
    %c0_i32_0 = arith.constant 0 : i32
    %c0_i32_1 = arith.constant 0 : i32
    return %c0_i32, %c0_i32_0 : i32, i32
  }
  func.func @transform_3(%arg0: i32) -> (i32, i32) {
    %c0_i32 = arith.constant 0 : i32
    %c0_i32_0 = arith.constant 0 : i32
    %c0_i32_1 = arith.constant 0 : i32
    return %c0_i32, %c0_i32_0 : i32, i32
  }
  func.func @transform_4(%arg0: i32) -> (i32, i32) {
    %c0_i32 = arith.constant 0 : i32
    %c0_i32_0 = arith.constant 0 : i32
    %c0_i32_1 = arith.constant 0 : i32
    return %c0_i32, %c0_i32_0 : i32, i32
  }
  func.func @transform_5(%arg0: i32) -> (i32, i32) {
    %c0_i32 = arith.constant 0 : i32
    %c0_i32_0 = arith.constant 0 : i32
    return %arg0, %c0_i32 : i32, i32
  }
}

</mosaic_0001>

<bundles_post_ra>
// kernel: positionwise_ffn.1
= control target key start
LH: loop header
LB: loop body
LE: loop exit
PB: predicated region body
PF: predicated region fallthrough
CT: control target
= control target key end

     0   :  { %v499_v2 = vmov 0   ;;  %s653_s0 = inlined_call_operand.vmem [shape: f32[16,128], index: 0, kind: input, shape index: {}]   ;;  %s654_s1 = inlined_call_operand.vmem [shape: bf16[128,256], index: 1, kind: input, shape index: {}]   ;;  %s655_s2 = inlined_call_operand.vmem [shape: f32[1,256], index: 2, kind: input, shape index: {}]   ;;  %s656_s3 = inlined_call_operand.vmem [shape: bf16[256,128], index: 3, kind: input, shape index: {}]   ;;  %s657_s4 = inlined_call_operand.vmem [shape: f32[1,128], index: 4, kind: input, shape index: {}]   ;;  %s658_s5 = inlined_call_operand.hbm [shape: f32[16,128], index: 5, kind: output, shape index: {}]  }
   0x1   :  { %v435_v0 = vld [vmem:[%s654_s1 + $0x4] ss:$8 sps:$4 sm:$0xff]   ;;  %v437_v1 = vld [vmem:[%s654_s1] ss:$8 sps:$4 sm:$0xff]   ;;  %165 = vmatprep.mubr.bf16.mxu0 %v499_v2  ;;  %v438_v3 = vld [vmem:[%s654_s1 + $0x14] ss:$8 sps:$4 sm:$0xff]  }
   0x2   :  { %133 = vmatprep.subr.bf16.mxu0 %v435_v0  ;;  %v440_v4 = vld [vmem:[%s654_s1 + $0x10] ss:$8 sps:$4 sm:$0xff]   ;;  %v441_v5 = vld [vmem:[%s654_s1 + $0x24] ss:$8 sps:$4 sm:$0xff]   ;;  %v443_v6 = vld [vmem:[%s654_s1 + $0x20] ss:$8 sps:$4 sm:$0xff]  }
   0x3   :  { %134 = vmatpush1.bf16.msra.mxu0 %v437_v1  ;;  %v444_v7 = vld [vmem:[%s654_s1 + $0x34] ss:$8 sps:$4 sm:$0xff]   ;;  %v446_v8 = vld [vmem:[%s654_s1 + $0x30] ss:$8 sps:$4 sm:$0xff]   ;;  %v447_v9 = vld [vmem:[%s654_s1 + $0x44] ss:$8 sps:$4 sm:$0xff]  }
   0x4   :  { %135 = vmatprep.subr.bf16.mxu0 %v438_v3  ;;  %v459_v10 = vld [vmem:[%s656_s3 + $0x40] sm:$0xff]   ;;  %v450_v13 = vld [vmem:[%s654_s1 + $0x54] ss:$8 sps:$4 sm:$0xff]   ;;  %v461_v14 = vld [vmem:[%s656_s3 + $0x48] sm:$0xff]  }
   0x5   :  { %v449_v11 = vld [vmem:[%s654_s1 + $0x40] ss:$8 sps:$4 sm:$0xff]   ;;  %409 = vmatprep.subr.bf16.mxu1 %v459_v10  ;;  %v463_v16 = vld [vmem:[%s656_s3 + $0x50] sm:$0xff]   ;;  %v453_v18 = vld [vmem:[%s654_s1 + $0x64] ss:$8 sps:$4 sm:$0xff]  }
   0x6   :  { %v460_v12 = vld [vmem:[%s656_s3] sm:$0xff]   ;;  %v462_v15 = vld [vmem:[%s656_s3 + $0x8] sm:$0xff]   ;;  %v452_v17 = vld [vmem:[%s654_s1 + $0x50] ss:$8 sps:$4 sm:$0xff]  }
   0x7   :  { %136 = vmatpush1.bf16.msra.mxu0 %v440_v4  ;;  %410 = vmatpush3.bf16.msra.mxu1 %v460_v12  ;;  %v464_v19 = vld [vmem:[%s656_s3 + $0x10] sm:$0xff]   ;;  %v465_v20 = vld [vmem:[%s656_s3 + $0x58] sm:$0xff]   ;;  %v455_v21 = vld [vmem:[%s654_s1 + $0x60] ss:$8 sps:$4 sm:$0xff]  }
   0x8   :  { %137 = vmatprep.subr.bf16.mxu0 %v441_v5  ;;  %411 = vmatprep.subr.bf16.mxu1 %v461_v14  ;;  %v456_v22 = vld [vmem:[%s654_s1 + $0x74] ss:$8 sps:$4 sm:$0xff]   ;;  %v467_v24 = vld [vmem:[%s656_s3 + $0x60] sm:$0xff]   ;;  %v458_v25 = vld [vmem:[%s654_s1 + $0x70] ss:$8 sps:$4 sm:$0xff]  }
   0x9   :  { %v466_v23 = vld [vmem:[%s656_s3 + $0x18] sm:$0xff]  }
   0xb   :  { %138 = vmatpush1.bf16.msra.mxu0 %v443_v6  ;;  %412 = vmatpush3.bf16.msra.mxu1 %v462_v15 }
   0xc   :  { %139 = vmatprep.subr.bf16.mxu0 %v444_v7  ;;  %413 = vmatprep.subr.bf16.mxu1 %v463_v16 }
   0xf   :  { %140 = vmatpush1.bf16.msra.mxu0 %v446_v8  ;;  %414 = vmatpush3.bf16.msra.mxu1 %v464_v19 }
  0x10   :  { %141 = vmatprep.subr.bf16.mxu0 %v447_v9  ;;  %415 = vmatprep.subr.bf16.mxu1 %v465_v20 }
  0x13   :  { %142 = vmatpush1.bf16.msra.mxu0 %v449_v11 }
  0x14   :  { %143 = vmatprep.subr.bf16.mxu0 %v450_v13 }
  0x17   :  { %144 = vmatpush1.bf16.msra.mxu0 %v452_v17 }
  0x18   :  { %145 = vmatprep.subr.bf16.mxu0 %v453_v18 }
  0x19   :  { %10 = vsyncpa [#allocation3], 0  ;;  %v22_v26 = vld [vmem:[%s653_s0] sm:$0xff]  ;;  %v23_v27 = vld [vmem:[%s653_s0 + $0x8] sm:$0xff]  ;;  %416 = vmatpush3.bf16.msra.mxu1 %v466_v23  ;;  %v43_v36 = vlaneseq  ;;  %s500_s11 = smov [#allocation2]  }
  0x1a   :  { %v468_v28 = vld [vmem:[%s656_s3 + $0x20] sm:$0xff]   ;;  %417 = vmatprep.subr.bf16.mxu1 %v467_v24  ;;  %v469_v29 = vld [vmem:[%s656_s3 + $0x68] sm:$0xff]   ;;  %v24_v30 = vpack.c.bf16 %v23_v27, %v22_v26  ;;  %v471_v32 = vld [vmem:[%s656_s3 + $0x70] sm:$0xff]   ;;  %s365_s12 = sshll.u32 %s500_s11, 4  ;;  %s366_s12 = int_to_ptr.vmem [resolvable:$true] %s365_s12 }
  0x1b   :  { %146 = vmatpush1.bf16.msra.mxu0 %v455_v21  ;;  %v470_v31 = vld [vmem:[%s656_s3 + $0x28] sm:$0xff]   ;;  %v472_v33 = vld [vmem:[%s656_s3 + $0x30] sm:$0xff]   ;;  %v473_v34 = vld [vmem:[%s656_s3 + $0x78] sm:$0xff]   ;;  %v44_v37 = vshrl.u32 %v43_v36, 7  ;;  %s475_s13 = scalar_lea.vmem %s366_s12, 256  ;;  %p480_p1 = scmp.lt.s32.totalorder %s366_s12, %s366_s12 }
  0x1c   :  { %147 = vmatprep.subr.bf16.mxu0 %v456_v22  ;;  %v474_v35 = vld [vmem:[%s656_s3 + $0x38] sm:$0xff]   ;;  %v41_v39 = vld [vmem:[%s655_s2] sm:$0x3]  ;;  %p476_p0 = scmp.ne.s32.totalorder %s366_s12, %s475_s13  ;;  %p481_p2 = scmp.lt.s32.totalorder %s475_s13, %s475_s13 }
  0x1d   :  { %418 = vmatpush3.bf16.msra.mxu1 %v468_v28  ;;  %v45_v38 = vsub.s32 0, %v44_v37  ;;  %v49_v40 = vsub.s32 1, %v44_v37  ;;  %v392_v58 = vld [vmem:[%s657_s4] ss:$0 sm:$0xff] }
  0x1e   :  { %419 = vmatprep.subr.bf16.mxu1 %v469_v29  ;;  %p482_p3 = por %p481_p2, %p480_p1 }
  0x1f   :  { %148 = vmatpush1.bf16.msra.mxu0 %v458_v25  ;;  %v46_v41 = vrot.slane %v41_v39, %v45_v38  ;;  %v50_v42 = vrot.slane %v41_v39, %v49_v40 }
  0x20   :  { %p483_p4 = pnand %p482_p3, %p476_p0 }
  0x21   :  { %420 = vmatpush3.bf16.msra.mxu1 %v470_v31 }
  0x22   :  { %166 = vmatmul.mubr.bf16.vlgmr.msra.gmra.mrb[0].mxu0 %v24_v30  ;;  %421 = vmatprep.subr.bf16.mxu1 %v471_v32 }
  0x25   :  { %422 = vmatpush3.bf16.msra.mxu1 %v472_v33 }
  0x26   :  { %423 = vmatprep.subr.bf16.mxu1 %v473_v34 }
  0x29   :  { %424 = vmatpush3.bf16.msra.mxu1 %v474_v35 }
  0xf5   :  { %v167_v43 = vpop.f32.mrb[0].mxu0 }
  0xf6   :  { %v168_v44 = vadd.f32 %v167_v43, %v46_v41  ;;  %v169_v45 = vpop.f32.mrb[1].mxu0 }
  0xf7   :  { %v170_v46 = vadd.f32 %v169_v45, %v50_v42  ;;  %v171_v47 = vpop.f32.mrb[2].mxu0 }
  0xf8   :  { %v172_v48 = vadd.f32 %v171_v47, %v46_v41  ;;  %v173_v49 = vpop.f32.mrb[3].mxu0  ;;  %v176_v51 = vmax.f32 %v168_v44, 0.0 }
  0xf9   :  { %v174_v50 = vadd.f32 %v173_v49, %v50_v42  ;;  %v177_v53 = vmax.f32 %v170_v46, 0.0 }
  0xfa   :  { %v178_v52 = vmax.f32 %v172_v48, 0.0 }
  0xfb   :  { %v179_v54 = vmax.f32 %v174_v50, 0.0 }
  0xfc   :  { %v180_v55 = vpack.c.bf16 %v178_v52, %v176_v51 }
  0xfd   :  { %v181_v56 = vpack.c.bf16 %v179_v54, %v177_v53 }
  0xff   :  { %349 = vmatprep.mubr.bf16.mxu1 %v181_v56 }
 0x100   :  { %350 = vmatmul.mubr.bf16.vlgmr.msra.gmra.mrb[0].mxu1 %v180_v55 }
 0x1d3   :  { %v425_v57 = vpop.f32.mrb[0].mxu1 }
 0x1d4   :  { %v426_v59 = vpop.f32.mrb[1].mxu1 }
 0x1d5   :  { %v427_v60 = vadd.f32 %v426_v59, %v425_v57  ;;  %v428_v61 = vpop.f32.mrb[2].mxu1 }
 0x1d6   :  { %v429_v62 = vpop.f32.mrb[3].mxu1 }
 0x1d7   :  { %v352_v63 = vadd.f32 %v427_v60, %v392_v58  ;;  %v430_v0 = vadd.f32 %v429_v62, %v428_v61 }
 0x1d9   :  { %358 = vst [vmem:[#allocation2] sm:$0xff] %v352_v63  ;;  %v355_v1 = vadd.f32 %v430_v0, %v392_v58 }
 0x1db   :  { %359 = vst [vmem:[#allocation2 + $0x8] sm:$0xff] %v355_v1 }
 0x1dc   :  { %486 = shalt.err (!%p483_p4)
}
 0x1dd   :  { %s487_s15 = scalar_lea.hbm %s658_s5, 256 }
 0x1de   :  { %p488_p5 = scmp.ne.s32.totalorder %s658_s5, %s487_s15  ;;  %p491_p6 = scmp.lt.u32.totalorder %s487_s15, %s658_s5 }
 0x1e0   :  { %p493_p7 = pnand %p491_p6, %p488_p5 }
 0x1e2   :  { %496 = shalt.err (!%p493_p7)
}
 0x1e3   :  { %s501_s20 = smov 128   ;;  %s502_s21 = smov 8  }
 0x1e4   :  { %371 = dma.vmem_to_hbm [thread:$0]  %s366_s12, 256, %s658_s5, [#allocation3], %s501_s20, %s501_s20, %s502_s21  }
 0x1e5   :  { %497 = dma.done.wait [#allocation3], 256  }
 0x1e6   :  { %498 = vsyncadd [#allocation3], 4294967040 }
 0x1e7   :  { %375 = vsyncpa [#allocation3], 1 }

</bundles_post_ra>
